<compile_context>
chip_gen: v7x
topology: tpu7x:2x2x1
jax: 0.10.0
libtpu: 0.0.40
codegen_flags: <defaults>
</compile_context>

<pallas_src>
import jax
import jax.numpy as jnp
from jax.experimental import pallas as pl
from jax.experimental.pallas import tpu as pltpu


def _svd_head_kernel(p_src_ref, f_src_ref, p_tgt_ref, f_tgt_ref, w_ref, b_ref,
                     out_ref, fa_scr, m_scr, acc_scr):
    """One (batch-block i, tgt-tile j) grid step of the SVDHead forward."""
    j = pl.program_id(1)
    n_tgt_tiles = pl.num_programs(1)
    bb, n_src, d_src = f_src_ref.shape
    d_tgt = f_tgt_ref.shape[-1]

    # ---- once per batch block: project f_src, reset online-softmax state ----
    @pl.when(j == 0)
    def _init():
        # NOTE: the (bb, n_src) collapse is layout-preserving when n_src % 8 == 0
        # (f32 sublane pack); otherwise Mosaic inserts a repack copy (perf only).
        f_src2d = f_src_ref[...].reshape(bb * n_src, d_src).astype(jnp.bfloat16)
        w = w_ref[...].astype(jnp.bfloat16)        # (d_src, d_tgt), pre-transposed W
        att = jnp.dot(f_src2d, w, preferred_element_type=jnp.float32) + b_ref[...]
        fa_scr[...] = att.reshape(bb, n_src, d_tgt).astype(jnp.bfloat16)
        m_scr[...] = jnp.full(m_scr.shape, -jnp.inf, jnp.float32)
        acc_scr[...] = jnp.zeros(acc_scr.shape, jnp.float32)

    # ---- flash-style online softmax over this N_tgt tile ----
    f_tgt = f_tgt_ref[...].astype(jnp.bfloat16)                   # (bb, tile, d_tgt)
    aff = jnp.einsum("bnd,bmd->bnm", fa_scr[...], f_tgt,
                     preferred_element_type=jnp.float32)          # (bb, N_src, tile)
    m_old = m_scr[...]
    m_new = jnp.maximum(m_old, jnp.max(aff, axis=2, keepdims=True))
    alpha = jnp.exp(m_old - m_new)                                # (bb, N_src, 1)
    e = jnp.exp(aff - m_new).astype(jnp.bfloat16)                 # (bb, N_src, tile)
    # p_tgt tile is channel-major + augmented with a ones row: [x; y; z; 1].
    # Column 3 of e @ [p_tgt|1] is the softmax row-sum -> no XLU sum reduce.
    p_aug = p_tgt_ref[...].astype(jnp.bfloat16)                   # (bb, 4, tile)
    contrib = jnp.einsum("bnm,bkm->bnk", e, p_aug,
                         preferred_element_type=jnp.float32)      # (bb, N_src, 4)
    acc_scr[...] = alpha * acc_scr[...] + contrib
    m_scr[...] = m_new

    # ---- once per batch block: centroids, H, packed output slab ----
    @pl.when(j == n_tgt_tiles - 1)
    def _finalize():
        acc = acc_scr[...]
        inv = pl.reciprocal(acc[:, :, 3:4], approx=False)          # exact softmax divide
        p_corr = acc[:, :, 0:3] * inv                              # (bb, N_src, 3)
        p_src = p_src_ref[...]                                     # (bb, 3, N_src) f32
        src_c = jnp.mean(p_src, axis=2, keepdims=True)             # (bb, 3, 1)
        corr_c = jnp.mean(p_corr, axis=1, keepdims=True)           # (bb, 1, 3)
        ps_c = p_src - src_c                                       # channel-major
        pc_c = p_corr - corr_c                                     # point-major
        # H[b,i,j] = sum_n ps_c[b,i,n] * pc_c[b,n,j]  (batched; no transposes,
        # no per-ib tiny matmuls).
        h = jnp.einsum("bin,bnj->bij", ps_c, pc_c,
                       preferred_element_type=jnp.float32)         # (bb, 3, 3)
        # Packed lane-padded slab, written only on the final tgt step:
        #   rows 0..2, cols 0..2 : H
        #   rows 0..2, col 3     : src centroid (column)
        #   row 3,     cols 0..2 : corr centroid (row)
        # TODO(synk): unaligned lane/sublane concat to build the slab fully in
        #             registers (single unmasked store) is riskier to lower;
        #             these few masked strips fire once per batch block only.
        out_ref[...] = jnp.zeros_like(out_ref)
        out_ref[:, 0:3, 0:3] = h
        out_ref[:, 0:3, 3:4] = src_c
        out_ref[:, 3:4, 0:3] = corr_c


def _pick_tgt_tile(n_tgt, max_tile=512):
    if n_tgt <= max_tile:
        return n_tgt
    for cand in (512, 384, 256, 128):
        if cand <= max_tile and n_tgt % cand == 0:
            return cand
    # TODO(synk): pad + mask the target axis when N_tgt has no 128-multiple
    #             divisor; fall back to a single (large) tile for now.
    return n_tgt


def svd_head_forward(p_src, f_src, p_tgt, f_tgt, weight, bias, *,
                     block_b=8, max_tgt_tile=512):
    """Pallas-backed equivalent of SVDHead.forward (returns (B, 4, 4) transforms)."""
    B, n_src, _ = p_src.shape
    _, n_tgt, in_dim_tgt = f_tgt.shape
    in_dim_src = f_src.shape[-1]
    assert weight.shape == (in_dim_tgt, in_dim_src)

    # Batch packing: keep >= 2 batch grid steps when B >= 2 so the 'parallel'
    # axis can shard across TensorCores (v7x megacore); also halves per-step
    # VMEM footprint vs packing everything into one step.
    bb = max(1, min(block_b, B // 2)) if B >= 2 else 1
    n_b_blocks = -(-B // bb)
    b_pad = n_b_blocks * bb

    tile_tgt = _pick_tgt_tile(n_tgt, max_tgt_tile)
    n_tgt_tiles = n_tgt // tile_tgt

    # Channel-major points: lane-dense DMA, no 3->128 lane padding.
    p_src_cm = jnp.swapaxes(p_src.astype(jnp.float32), 1, 2)        # (B, 3, N_src)
    p_tgt_cm = jnp.swapaxes(p_tgt.astype(jnp.float32), 1, 2)        # (B, 3, N_tgt)
    # Features stay f32 in HBM; bf16 cast happens inside the kernel.
    f_src_f = f_src.astype(jnp.float32)
    f_tgt_f = f_tgt.astype(jnp.float32)
    w_t = jnp.swapaxes(weight.astype(jnp.float32), 0, 1)            # (d_src, d_tgt)
    bias2d = bias.reshape(1, in_dim_tgt).astype(jnp.float32)

    if b_pad != B:
        pad = ((0, b_pad - B), (0, 0), (0, 0))
        p_src_cm = jnp.pad(p_src_cm, pad)
        p_tgt_cm = jnp.pad(p_tgt_cm, pad)
        f_src_f = jnp.pad(f_src_f, pad)
        f_tgt_f = jnp.pad(f_tgt_f, pad)

    # Ones row appended AFTER padding so padded batches keep a nonzero row-sum.
    p_tgt_aug = jnp.concatenate(
        [p_tgt_cm, jnp.ones((b_pad, 1, n_tgt), jnp.float32)], axis=1)  # (b_pad, 4, N_tgt)

    cost = pl.CostEstimate(
        flops=int(2 * b_pad * n_src * (in_dim_src * in_dim_tgt
                                       + in_dim_tgt * n_tgt + 4 * n_tgt + 9)),
        transcendentals=int(b_pad * n_src * (n_tgt + n_tgt_tiles)),
        bytes_accessed=int(4 * (p_src_cm.size + p_tgt_aug.size + f_src_f.size
                                + f_tgt_f.size + w_t.size + bias2d.size)
                           + 4 * b_pad * 8 * 128),
    )

    packed = pl.pallas_call(
        _svd_head_kernel,
        out_shape=jax.ShapeDtypeStruct((b_pad, 8, 128), jnp.float32),
        grid_spec=pltpu.PrefetchScalarGridSpec(
            num_scalar_prefetch=0,
            grid=(b_pad // bb, n_tgt_tiles),
            in_specs=[
                pl.BlockSpec((bb, 3, n_src), lambda i, j: (i, 0, 0)),
                pl.BlockSpec((bb, n_src, in_dim_src), lambda i, j: (i, 0, 0)),
                pl.BlockSpec((bb, 4, tile_tgt), lambda i, j: (i, 0, j)),
                pl.BlockSpec((bb, tile_tgt, in_dim_tgt), lambda i, j: (i, j, 0)),
                pl.BlockSpec((in_dim_src, in_dim_tgt), lambda i, j: (0, 0)),
                pl.BlockSpec((1, in_dim_tgt), lambda i, j: (0, 0)),
            ],
            out_specs=pl.BlockSpec((bb, 8, 128), lambda i, j: (i, 0, 0)),
            scratch_shapes=[
                pltpu.VMEM((bb, n_src, in_dim_tgt), jnp.bfloat16),  # cached f_src@W+b
                pltpu.VMEM((bb, n_src, 1), jnp.float32),            # running max
                pltpu.VMEM((bb, n_src, 4), jnp.float32),            # e@[p_tgt|1] accum
            ],
        ),
        compiler_params=pltpu.CompilerParams(
            dimension_semantics=("parallel", "arbitrary"),
            vmem_limit_bytes=48 * 1024 * 1024),
        cost_estimate=cost,
    )(p_src_cm, f_src_f, p_tgt_aug, f_tgt_f, w_t, bias2d)

    packed = packed[:B]
    h = packed[:, 0:3, 0:3]          # (B, 3, 3)
    src_cent = packed[:, 0:3, 3]     # (B, 3)  (stored as a column)
    corr_cent = packed[:, 3, 0:3]    # (B, 3)

    # --- glue: 3x3 SVD, reflection fix, rigid transform assembly (plain JAX) ---
    # TODO(synk): 3x3 SVD / determinant have no Pallas TPU primitive; torch.svd's
    #             LinAlgError fallback branch is not replicated (jnp SVD doesn't raise).
    U, _, Vh = jnp.linalg.svd(h)             # h = U @ diag(S) @ Vh
    V = jnp.swapaxes(Vh, -1, -2)             # match torch.svd's V convention
    Ut = jnp.swapaxes(U, -1, -2)
    R = V @ Ut
    det = jnp.linalg.det(R)
    diag = jnp.array([1.0, 1.0, -1.0], dtype=R.dtype)
    R_det_neg = (V * diag) @ Ut              # scales V's last column
    R = jnp.where(det[:, None, None] < 0, R_det_neg, R)

    t = corr_cent - jnp.einsum("bij,bj->bi", R, src_cent)

    transform = jnp.tile(jnp.eye(4, dtype=R.dtype)[None], (R.shape[0], 1, 1))
    transform = transform.at[:, :3, :3].set(R)
    transform = transform.at[:, :3, 3].set(t)
    return transform


if __name__ == "__main__":
    # Small shapes consistent with the module's forward.
    B = 2
    N_SRC = 8
    N_TGT = 8
    IN_DIM_SRC = 32
    IN_DIM_TGT = 32

    key = jax.random.PRNGKey(0)
    k1, k2, k3, k4, k5, k6 = jax.random.split(key, 6)

    p_src = jax.random.normal(k1, (B, N_SRC, 3), dtype=jnp.float32)
    f_src = jax.random.normal(k2, (B, N_SRC, IN_DIM_SRC), dtype=jnp.float32)
    p_tgt = jax.random.normal(k3, (B, N_TGT, 3), dtype=jnp.float32)
    f_tgt = jax.random.normal(k4, (B, N_TGT, IN_DIM_TGT), dtype=jnp.float32)

    # Deterministic nn.Linear(in_dim_src, in_dim_tgt) parameters.
    weight = 0.05 * jax.random.normal(k5, (IN_DIM_TGT, IN_DIM_SRC), dtype=jnp.float32)
    bias = 0.05 * jax.random.normal(k6, (IN_DIM_TGT,), dtype=jnp.float32)

    transform = svd_head_forward(p_src, f_src, p_tgt, f_tgt, weight, bias)
    transform = jax.block_until_ready(transform)

    assert transform.shape == (B, 4, 4)
    assert bool(jnp.all(jnp.isfinite(transform)))
    print("KERNEL_OK")
</pallas_src>

<mosaic_0001>
module attributes {stable_mosaic.version = 11 : i64} {
  func.func @_svd_head_kernel(%arg0: i32, %arg1: i32, %arg2: memref<1x3x8xf32, #tpu.memory_space<vmem>>, %arg3: memref<1x8x32xf32, #tpu.memory_space<vmem>>, %arg4: memref<1x4x8xf32, #tpu.memory_space<vmem>>, %arg5: memref<1x8x32xf32, #tpu.memory_space<vmem>>, %arg6: memref<32x32xf32, #tpu.memory_space<vmem>>, %arg7: memref<1x32xf32, #tpu.memory_space<vmem>>, %arg8: memref<1x8x128xf32, #tpu.memory_space<vmem>>, %arg9: memref<1x8x32xbf16, #tpu.memory_space<vmem>>, %arg10: memref<1x8x1xf32, #tpu.memory_space<vmem>>, %arg11: memref<1x8x4xf32, #tpu.memory_space<vmem>>) attributes {dimension_semantics = [#tpu.dimension_semantics<parallel>, #tpu.dimension_semantics<arbitrary>], iteration_bounds = array<i64: 2, 1>, scalar_prefetch = 0 : i64, scratch_operands = 3 : i64, tpu.core_type = #tpu.core_type<tc>, window_params = [{transform_indices = @transform_0, window_bounds = array<i64: 1, 3, 8>}, {transform_indices = @transform_1, window_bounds = array<i64: 1, 8, 32>}, {transform_indices = @transform_2, window_bounds = array<i64: 1, 4, 8>}, {transform_indices = @transform_3, window_bounds = array<i64: 1, 8, 32>}, {pipeline_mode = #tpu.pipeline_mode<synchronous>, transform_indices = @transform_4, window_bounds = array<i64: 32, 32>}, {pipeline_mode = #tpu.pipeline_mode<synchronous>, transform_indices = @transform_5, window_bounds = array<i64: 1, 32>}, {transform_indices = @transform_6, window_bounds = array<i64: 1, 8, 128>}]} {
    %c0_i32 = arith.constant 0 : i32
    %0 = arith.cmpi eq, %arg1, %c0_i32 : i32
    %1 = arith.extui %0 : i1 to i32
    %c0_i32_0 = arith.constant 0 : i32
    %2 = arith.cmpi ne, %1, %c0_i32_0 : i32
    scf.if %2 {
      %c0_25 = arith.constant 0 : index
      %c0_26 = arith.constant 0 : index
      %c0_27 = arith.constant 0 : index
      %29 = vector.load %arg3[%c0_25, %c0_26, %c0_27] : memref<1x8x32xf32, #tpu.memory_space<vmem>>, vector<1x8x32xf32>
      %30 = vector.shape_cast %29 : vector<1x8x32xf32> to vector<8x32xf32>
      %31 = arith.truncf %30 : vector<8x32xf32> to vector<8x32xbf16>
      %c0_28 = arith.constant 0 : index
      %c0_29 = arith.constant 0 : index
      %32 = vector.load %arg6[%c0_28, %c0_29] : memref<32x32xf32, #tpu.memory_space<vmem>>, vector<32x32xf32>
      %33 = arith.truncf %32 : vector<32x32xf32> to vector<32x32xbf16>
      %cst_30 = arith.constant dense<0.000000e+00> : vector<8x32xf32>
      %34 = tpu.matmul %31, %33, %cst_30 {dimension_numbers = #tpu.dot_dimension_numbers<[1], [0], [0], [1], [0, 0, 1, 1], [], []>} : vector<8x32xbf16>, vector<32x32xbf16>, vector<8x32xf32> -> vector<8x32xf32>
      %c0_31 = arith.constant 0 : index
      %c0_32 = arith.constant 0 : index
      %35 = vector.load %arg7[%c0_31, %c0_32] : memref<1x32xf32, #tpu.memory_space<vmem>>, vector<1x32xf32>
      %36 = vector.broadcast %35 : vector<1x32xf32> to vector<8x32xf32>
      %37 = arith.addf %34, %36 : vector<8x32xf32>
      %38 = vector.shape_cast %37 : vector<8x32xf32> to vector<1x8x32xf32>
      %39 = arith.truncf %38 : vector<1x8x32xf32> to vector<1x8x32xbf16>
      %c0_33 = arith.constant 0 : index
      %c0_34 = arith.constant 0 : index
      %c0_35 = arith.constant 0 : index
      %40 = vector.load %arg9[%c0_33, %c0_34, %c0_35] : memref<1x8x32xbf16, #tpu.memory_space<vmem>>, vector<1x8x32xbf16>
      tpu.vector_store %arg9[%c0_33, %c0_34, %c0_35], %39 {strides = array<i32>} : memref<1x8x32xbf16, #tpu.memory_space<vmem>>, vector<1x8x32xbf16>,
      %cst_36 = arith.constant 0xFF800000 : f32
      %41 = vector.broadcast %cst_36 : f32 to vector<1x8x1xf32>
      %c0_37 = arith.constant 0 : index
      %c0_38 = arith.constant 0 : index
      %c0_39 = arith.constant 0 : index
      %42 = vector.load %arg10[%c0_37, %c0_38, %c0_39] : memref<1x8x1xf32, #tpu.memory_space<vmem>>, vector<1x8x1xf32>
      tpu.vector_store %arg10[%c0_37, %c0_38, %c0_39], %41 {strides = array<i32>} : memref<1x8x1xf32, #tpu.memory_space<vmem>>, vector<1x8x1xf32>,
      %cst_40 = arith.constant 0.000000e+00 : f32
      %43 = vector.broadcast %cst_40 : f32 to vector<1x8x4xf32>
      %c0_41 = arith.constant 0 : index
      %c0_42 = arith.constant 0 : index
      %c0_43 = arith.constant 0 : index
      %44 = vector.load %arg11[%c0_41, %c0_42, %c0_43] : memref<1x8x4xf32, #tpu.memory_space<vmem>>, vector<1x8x4xf32>
      tpu.vector_store %arg11[%c0_41, %c0_42, %c0_43], %43 {strides = array<i32>} : memref<1x8x4xf32, #tpu.memory_space<vmem>>, vector<1x8x4xf32>,
    } else {
    }
    %c0 = arith.constant 0 : index
    %c0_1 = arith.constant 0 : index
    %c0_2 = arith.constant 0 : index
    %3 = vector.load %arg5[%c0, %c0_1, %c0_2] : memref<1x8x32xf32, #tpu.memory_space<vmem>>, vector<1x8x32xf32>
    %4 = arith.truncf %3 : vector<1x8x32xf32> to vector<1x8x32xbf16>
    %c0_3 = arith.constant 0 : index
    %c0_4 = arith.constant 0 : index
    %c0_5 = arith.constant 0 : index
    %5 = vector.load %arg9[%c0_3, %c0_4, %c0_5] : memref<1x8x32xbf16, #tpu.memory_space<vmem>>, vector<1x8x32xbf16>
    "tpu.trace_start"() <{level = 10 : i32, message = "bnd,bmd->bnm"}> : () -> ()
    %cst = arith.constant dense<0.000000e+00> : vector<1x8x8xf32>
    %6 = tpu.matmul %5, %4, %cst {dimension_numbers = #tpu.dot_dimension_numbers<[2], [2], [1], [1], [0, 0, 0, 1, 1, 1], [0], [0]>} : vector<1x8x32xbf16>, vector<1x8x32xbf16>, vector<1x8x8xf32> -> vector<1x8x8xf32>
    "tpu.trace_stop"() : () -> ()
    %c0_6 = arith.constant 0 : index
    %c0_7 = arith.constant 0 : index
    %c0_8 = arith.constant 0 : index
    %7 = vector.load %arg10[%c0_6, %c0_7, %c0_8] : memref<1x8x1xf32, #tpu.memory_space<vmem>>, vector<1x8x1xf32>
    %cst_9 = arith.constant dense<0xFF800000> : vector<1x8xf32>
    %8 = vector.multi_reduction <maximumf>, %6, %cst_9 [2] : vector<1x8x8xf32> to vector<1x8xf32>
    %9 = vector.shape_cast %8 : vector<1x8xf32> to vector<1x8x1xf32>
    %10 = arith.maximumf %7, %9 : vector<1x8x1xf32>
    %11 = arith.subf %7, %10 : vector<1x8x1xf32>
    %12 = math.exp %11 : vector<1x8x1xf32>
    %13 = vector.broadcast %10 : vector<1x8x1xf32> to vector<1x8x8xf32>
    %14 = arith.subf %6, %13 : vector<1x8x8xf32>
    %15 = math.exp %14 : vector<1x8x8xf32>
    %16 = arith.truncf %15 : vector<1x8x8xf32> to vector<1x8x8xbf16>
    %c0_10 = arith.constant 0 : index
    %c0_11 = arith.constant 0 : index
    %c0_12 = arith.constant 0 : index
    %17 = vector.load %arg4[%c0_10, %c0_11, %c0_12] : memref<1x4x8xf32, #tpu.memory_space<vmem>>, vector<1x4x8xf32>
    %18 = arith.truncf %17 : vector<1x4x8xf32> to vector<1x4x8xbf16>
    "tpu.trace_start"() <{level = 10 : i32, message = "bnm,bkm->bnk"}> : () -> ()
    %cst_13 = arith.constant dense<0.000000e+00> : vector<1x8x4xf32>
    %19 = tpu.matmul %16, %18, %cst_13 {dimension_numbers = #tpu.dot_dimension_numbers<[2], [2], [1], [1], [0, 0, 0, 1, 1, 1], [0], [0]>} : vector<1x8x8xbf16>, vector<1x4x8xbf16>, vector<1x8x4xf32> -> vector<1x8x4xf32>
    "tpu.trace_stop"() : () -> ()
    %c0_14 = arith.constant 0 : index
    %c0_15 = arith.constant 0 : index
    %c0_16 = arith.constant 0 : index
    %20 = vector.load %arg11[%c0_14, %c0_15, %c0_16] : memref<1x8x4xf32, #tpu.memory_space<vmem>>, vector<1x8x4xf32>
    %21 = vector.broadcast %12 : vector<1x8x1xf32> to vector<1x8x4xf32>
    %22 = arith.mulf %21, %20 : vector<1x8x4xf32>
    %23 = arith.addf %22, %19 : vector<1x8x4xf32>
    %c0_17 = arith.constant 0 : index
    %c0_18 = arith.constant 0 : index
    %c0_19 = arith.constant 0 : index
    %24 = vector.load %arg11[%c0_17, %c0_18, %c0_19] : memref<1x8x4xf32, #tpu.memory_space<vmem>>, vector<1x8x4xf32>
    tpu.vector_store %arg11[%c0_17, %c0_18, %c0_19], %23 {strides = array<i32>} : memref<1x8x4xf32, #tpu.memory_space<vmem>>, vector<1x8x4xf32>,
    %c0_20 = arith.constant 0 : index
    %c0_21 = arith.constant 0 : index
    %c0_22 = arith.constant 0 : index
    %25 = vector.load %arg10[%c0_20, %c0_21, %c0_22] : memref<1x8x1xf32, #tpu.memory_space<vmem>>, vector<1x8x1xf32>
    tpu.vector_store %arg10[%c0_20, %c0_21, %c0_22], %10 {strides = array<i32>} : memref<1x8x1xf32, #tpu.memory_space<vmem>>, vector<1x8x1xf32>,
    %c0_i32_23 = arith.constant 0 : i32
    %26 = arith.cmpi eq, %arg1, %c0_i32_23 : i32
    %27 = arith.extui %26 : i1 to i32
    %c0_i32_24 = arith.constant 0 : i32
    %28 = arith.cmpi ne, %27, %c0_i32_24 : i32
    scf.if %28 {
      %c0_25 = arith.constant 0 : index
      %c0_26 = arith.constant 0 : index
      %c0_27 = arith.constant 0 : index
      %29 = vector.load %arg11[%c0_25, %c0_26, %c0_27] : memref<1x8x4xf32, #tpu.memory_space<vmem>>, vector<1x8x4xf32>
      %30 = vector.extract_strided_slice %29 {offsets = [0, 0, 3], sizes = [1, 8, 1], strides = [1, 1, 1]} : vector<1x8x4xf32> to vector<1x8x1xf32>
      %31 = tpu.reciprocal %30 : vector<1x8x1xf32> -> vector<1x8x1xf32>
      %32 = vector.extract_strided_slice %29 {offsets = [0, 0, 0], sizes = [1, 8, 3], strides = [1, 1, 1]} : vector<1x8x4xf32> to vector<1x8x3xf32>
      %33 = vector.broadcast %31 : vector<1x8x1xf32> to vector<1x8x3xf32>
      %34 = arith.mulf %32, %33 : vector<1x8x3xf32>
      %c0_28 = arith.constant 0 : index
      %c0_29 = arith.constant 0 : index
      %c0_30 = arith.constant 0 : index
      %35 = vector.load %arg2[%c0_28, %c0_29, %c0_30] : memref<1x3x8xf32, #tpu.memory_space<vmem>>, vector<1x3x8xf32>
      %cst_31 = arith.constant dense<0.000000e+00> : vector<1x3xf32>
      %36 = vector.multi_reduction <add>, %35, %cst_31 [2] : vector<1x3x8xf32> to vector<1x3xf32>
      %37 = vector.shape_cast %36 : vector<1x3xf32> to vector<1x3x1xf32>
      %cst_32 = arith.constant 8.000000e+00 : f32
      %38 = vector.broadcast %cst_32 : f32 to vector<1x3x1xf32>
      %39 = arith.divf %37, %38 : vector<1x3x1xf32>
      %cst_33 = arith.constant dense<0.000000e+00> : vector<1x3xf32>
      %40 = vector.multi_reduction <add>, %34, %cst_33 [1] : vector<1x8x3xf32> to vector<1x3xf32>
      %41 = vector.shape_cast %40 : vector<1x3xf32> to vector<1x1x3xf32>
      %cst_34 = arith.constant 8.000000e+00 : f32
      %42 = vector.broadcast %cst_34 : f32 to vector<1x1x3xf32>
      %43 = arith.divf %41, %42 : vector<1x1x3xf32>
      %44 = vector.broadcast %39 : vector<1x3x1xf32> to vector<1x3x8xf32>
      %45 = arith.subf %35, %44 : vector<1x3x8xf32>
      %46 = vector.broadcast %43 : vector<1x1x3xf32> to vector<1x8x3xf32>
      %47 = arith.subf %34, %46 : vector<1x8x3xf32>
      "tpu.trace_start"() <{level = 10 : i32, message = "bin,bnj->bij"}> : () -> ()
      %cst_35 = arith.constant dense<0.000000e+00> : vector<1x3x3xf32>
      %48 = tpu.matmul %45, %47, %cst_35 {dimension_numbers = #tpu.dot_dimension_numbers<[2], [1], [1], [2], [0, 0, 0, 1, 1, 2], [0], [0]>} : vector<1x3x8xf32>, vector<1x8x3xf32>, vector<1x3x3xf32> -> vector<1x3x3xf32>
      %cst_36 = arith.constant 0.000000e+00 : f32
      "tpu.trace_stop"() : () -> ()
      %49 = vector.broadcast %cst_36 : f32 to vector<1x8x128xf32>
      %c0_37 = arith.constant 0 : index
      %c0_38 = arith.constant 0 : index
      %c0_39 = arith.constant 0 : index
      %50 = vector.load %arg8[%c0_37, %c0_38, %c0_39] : memref<1x8x128xf32, #tpu.memory_space<vmem>>, vector<1x8x128xf32>
      tpu.vector_store %arg8[%c0_37, %c0_38, %c0_39], %49 {strides = array<i32>} : memref<1x8x128xf32, #tpu.memory_space<vmem>>, vector<1x8x128xf32>,
      %c0_40 = arith.constant 0 : index
      %c0_41 = arith.constant 0 : index
      %c0_42 = arith.constant 0 : index
      %51 = vector.load %arg8[%c0_40, %c0_41, %c0_42] : memref<1x8x128xf32, #tpu.memory_space<vmem>>, vector<1x3x3xf32>
      tpu.vector_store %arg8[%c0_40, %c0_41, %c0_42], %48 {strides = array<i32>} : memref<1x8x128xf32, #tpu.memory_space<vmem>>, vector<1x3x3xf32>,
      %c0_43 = arith.constant 0 : index
      %c0_44 = arith.constant 0 : index
      %c3 = arith.constant 3 : index
      %52 = vector.load %arg8[%c0_43, %c0_44, %c3] : memref<1x8x128xf32, #tpu.memory_space<vmem>>, vector<1x3x1xf32>
      tpu.vector_store %arg8[%c0_43, %c0_44, %c3], %39 {strides = array<i32>} : memref<1x8x128xf32, #tpu.memory_space<vmem>>, vector<1x3x1xf32>,
      %c0_45 = arith.constant 0 : index
      %c3_46 = arith.constant 3 : index
      %c0_47 = arith.constant 0 : index
      %53 = vector.load %arg8[%c0_45, %c3_46, %c0_47] : memref<1x8x128xf32, #tpu.memory_space<vmem>>, vector<1x1x3xf32>
      tpu.vector_store %arg8[%c0_45, %c3_46, %c0_47], %43 {strides = array<i32>} : memref<1x8x128xf32, #tpu.memory_space<vmem>>, vector<1x1x3xf32>,
    } else {
    }
    return
  }
  func.func @transform_0(%arg0: i32, %arg1: i32) -> (i32, i32, i32) {
    %c0_i32 = arith.constant 0 : i32
    %c0_i32_0 = arith.constant 0 : i32
    %c0_i32_1 = arith.constant 0 : i32
    return %arg0, %c0_i32, %c0_i32_0 : i32, i32, i32
  }
  func.func @transform_1(%arg0: i32, %arg1: i32) -> (i32, i32, i32) {
    %c0_i32 = arith.constant 0 : i32
    %c0_i32_0 = arith.constant 0 : i32
    %c0_i32_1 = arith.constant 0 : i32
    return %arg0, %c0_i32, %c0_i32_0 : i32, i32, i32
  }
  func.func @transform_2(%arg0: i32, %arg1: i32) -> (i32, i32, i32) {
    %c0_i32 = arith.constant 0 : i32
    %c0_i32_0 = arith.constant 0 : i32
    return %arg0, %c0_i32, %arg1 : i32, i32, i32
  }
  func.func @transform_3(%arg0: i32, %arg1: i32) -> (i32, i32, i32) {
    %c0_i32 = arith.constant 0 : i32
    %c0_i32_0 = arith.constant 0 : i32
    return %arg0, %arg1, %c0_i32 : i32, i32, i32
  }
  func.func @transform_4(%arg0: i32, %arg1: i32) -> (i32, i32) {
    %c0_i32 = arith.constant 0 : i32
    %c0_i32_0 = arith.constant 0 : i32
    %c0_i32_1 = arith.constant 0 : i32
    return %c0_i32, %c0_i32_0 : i32, i32
  }
  func.func @transform_5(%arg0: i32, %arg1: i32) -> (i32, i32) {
    %c0_i32 = arith.constant 0 : i32
    %c0_i32_0 = arith.constant 0 : i32
    %c0_i32_1 = arith.constant 0 : i32
    return %c0_i32, %c0_i32_0 : i32, i32
  }
  func.func @transform_6(%arg0: i32, %arg1: i32) -> (i32, i32, i32) {
    %c0_i32 = arith.constant 0 : i32
    %c0_i32_0 = arith.constant 0 : i32
    %c0_i32_1 = arith.constant 0 : i32
    return %arg0, %c0_i32, %c0_i32_0 : i32, i32, i32
  }
}

</mosaic_0001>

<bundles_post_ra>
// kernel: tpu_custom_call.1
= control target key start
LH: loop header
LB: loop body
LE: loop exit
PB: predicated region body
PF: predicated region fallthrough
CT: control target
= control target key end

     0   :  { %s1514_s0 = inlined_call_operand.vmem [shape: f32[2,3,8], index: 0, kind: input, shape index: {}]   ;;  %s1515_s1 = inlined_call_operand.vmem [shape: f32[2,8,32], index: 1, kind: input, shape index: {}]   ;;  %s1516_s2 = inlined_call_operand.hbm [shape: f32[2,4,8], index: 2, kind: input, shape index: {}]   ;;  %s1517_s3 = inlined_call_operand.hbm [shape: f32[2,8,32], index: 3, kind: input, shape index: {}]   ;;  %s1518_s4 = inlined_call_operand.hbm [shape: f32[32,32], index: 4, kind: input, shape index: {}]   ;;  %s1519_s5 = inlined_call_operand.vmem [shape: f32[1,32], index: 5, kind: input, shape index: {}]   ;;  %s1520_s6 = inlined_call_operand.hbm [shape: f32[2,8,128], index: 6, kind: output, shape index: {}]  }
   0x1   :  { %1526 = sst [smem:[#allocation18_spill]] %s1516_s2 }
   0x2   :  { %1527 = sst [smem:[#allocation19_spill]] %s1518_s4 }
   0x3   :  { %11 = vsyncpa [#allocation6], 0 }
   0x4   :  { %13 = vsyncpa [#allocation6 + $0x1], 0 }
   0x5   :  { %14 = vsyncpa [#allocation9], 0 }
   0x6   :  { %16 = vsyncpa [#allocation9 + $0x1], 0 }
   0x7   :  { %17 = vsyncpa [#allocation7], 0 }
   0x8   :  { %19 = vsyncpa [#allocation7 + $0x1], 0  ;;  %s1208_s21 = smov 0   ;;  %s1210_s22 = smov 0  }
   0x9   :  { %s1212_s23 = smov 0   ;;  %s1214_s24 = smov 0  }
   0xa   :  { %s1216_s25 = smov 0   ;;  %s1218_s26 = smov 0  }
   0xb LB: > { %s1239_s27 = sadd.s32 4294967295, %s1160_s26   ;;  %s829_s28 = sadd.s32 4294967294, %s1160_s26   ;;  %s1160_s26 = sphi %s1218_s26, %s25_s26   ;;  %s1156_s25 = sphi %s1216_s25, %s1554_s25   ;;  %s1152_s24 = sphi %s1214_s24, %s1553_s24   ;;  %s1148_s23 = sphi %s1212_s23, %s1552_s23   ;;  %s1144_s22 = sphi %s1210_s22, %s1551_s22   ;;  %s1140_s21 = sphi %s1208_s21, %s1550_s21  }
   0xc   : > { %p111_p0 = scmp.ne.s32.totalorder %s1144_s22, %s1140_s21  ;;  %p1521_p1 = scmp.eq.s32.totalorder %s1239_s27, 0 }
   0xd   : > { %p211_p3 = scmp.eq.s32.totalorder %s829_s28, 1  ;;  %p830_p5 = scmp.ge.s32.totalorder %s1160_s26, 1 }
   0xe   : > { %p1248_p4 = por %p1521_p1, %p111_p0  ;;  %p218_p7 = scmp.lt.s32.totalorder %s1160_s26, 3 }
   0xf   : > { %p1253_p6 = por %p211_p3, %p111_p0  ;;  %s1162_s8 = smov [#allocation10]  }
  0x10   : > { %s1528_s29 = scalar_select %p1248_p4, 1, 0 }
  0x11   : > { %s1529_s30 = scalar_select %p1253_p6, 1, 0 }
  0x12   : > { %p1258_p8 = pnand %p830_p5, %p218_p7  ;;  %s230_s9 = sshll.u32 %s1162_s8, 4  ;;  %s231_s9 = int_to_ptr.vmem [resolvable:$true] %s230_s9 }
  0x13   : > { %s37_s11 = sadd.s32 1, %s1156_s25  ;;  %s1532_s4 = sld [smem:[#allocation19_spill]] }
  0x14   : > { %s1530_s7 = scalar_select %p1258_p8, 1, 0 }
  0x15   : > { %p897_p9 = pneg %p1258_p8 }
  0x17   : > { %p1267_p11 = pnand %p897_p9, %p1521_p1 }
  0x19   : > { %s982_s14 = scalar_lea.hbm %s1532_s4, 512  ;;  %p984_p13 = pneg %p1267_p11 }
  0x1a   : > { %p983_p12 = scmp.ne.s32.totalorder %s1532_s4, %s982_s14  ;;  %p989_p5 = scmp.lt.u32.totalorder %s982_s14, %s1532_s4 }
  0x1c   : > { %p985_p0 = pnand %p984_p13, %p983_p12 }
  0x1e   : > { %p986_p3 = pneg %p985_p0 }
  0x20   : > { %p991_p7 = pnand %p989_p5, %p986_p3 }
  0x22   : > { %994 = shalt.err (!%p991_p7)
}
  0x23   : > { %s995_s19 = scalar_lea.vmem %s231_s9, 512  ;;  %p1003_p2 = scmp.lt.s32.totalorder %s231_s9, %s231_s9 }
  0x24   : > { %p996_p9 = scmp.ne.s32.totalorder %s231_s9, %s995_s19  ;;  %p1004_p6 = scmp.lt.s32.totalorder %s995_s19, %s995_s19 }
  0x26   : > { %p998_p10 = pnand %p996_p9, %p984_p13  ;;  %p1005_p4 = por %p1004_p6, %p1003_p2 }
  0x28   : > { %p999_p1 = pneg %p998_p10 }
  0x2a   : > { %p1006_p8 = pnand %p1005_p4, %p999_p1 }
  0x2c   : > { %1009 = shalt.err (!%p1006_p8)
}
  0x2d   : > { %s1163_s20 = smov 128   ;;  %s1164_s28 = smov 8  }
  0x2e   : > { %900 = dma.hbm_to_vmem [thread:$0]  (!%p1267_p11), %s1532_s4, 512, %s231_s9, [#allocation9], %s1163_s20, %s1163_s20, %s1164_s28  }
  0x2f   : > { %p39_p1 = scmp.ge.s32.totalorder %s37_s11, 2  ;;  %s98_s13 = sadd.s32 1, %s1148_s23 }
  0x30   : > { %p105_p2 = scmp.ne.s32.totalorder %s1148_s23, %s1144_s22  ;;  %p106_p4 = scmp.eq.s32.totalorder %s1160_s26, 0 }
  0x31   : > { %s1556_s11 = smov (%p39_p1, %s37_s11), 0  ;;  %p1535_p8 = scmp.eq.s32.totalorder %s1239_s27, 1 }
  0x32   : > { %1533 = sst [smem:[#allocation16_spill]] %s1556_s11  ;;  %p1294_p6 = por %p106_p4, %p105_p2 }
  0x33   : > { %p1300_p10 = por %p1535_p8, %p105_p2  ;;  %s93_s15 = ssub.s32 %s1156_s25, %s1556_s11 }
  0x34   : > { %p913_p11 = scmp.lt.s32.totalorder %s1160_s26, 2  ;;  %p96_p12 = scmp.eq.s32.totalorder %s93_s15, 0 }
  0x35   : > { %s1536_s10 = scalar_select %p1300_p10, 1, 0 }
  0x36   : > { %s1308_s9 = sand.u32 1, %s1148_s23   ;;  %s834_s18 = sshll.u32 %s1156_s25, 6 }
  0x37   : > { %s833_s16 = sshll.u32 %s1308_s9, 2  ;;  %s1538_s2 = sld [smem:[#allocation18_spill]] }
  0x38   : > { %s1312_s17 = scalar_select %p96_p12, %s1148_s23, %s98_s13  }
  0x39   : > { %s265_s8 = scalar_lea.vmem [#allocation5], %s833_s16  ;;  %p1324_p13 = pnand %p913_p11, %p1294_p6 }
  0x3a   : > { %1537 = sst [smem:[#allocation17_spill]] %s1312_s17  ;;  %s273_s12 = sshll.u32 %s265_s8, 4  ;;  %s1320_s12 = int_to_ptr.vmem [resolvable:$true] %s273_s12 }
  0x3b   : > { %s835_s4 = sshll.u32 %s1308_s9, 3  ;;  %s262_s19 = scalar_lea.sflag [#allocation6], %s1308_s9 }
  0x3c   : > { %p1012_p3 = pneg %p1324_p13 }
  0x3d   : > { %s1318_s28 = scalar_lea.hbm %s1538_s2, %s834_s18  ;;  %s1015_s14 = scalar_lea.hbm %s1538_s2, 128 }
  0x3e   : > { %s1010_s18 = scalar_lea.hbm %s1318_s28, 64  ;;  %p1016_p9 = scmp.lt.u32.totalorder %s1318_s28, %s1538_s2 }
  0x3f   : > { %p1011_p0 = scmp.ne.s32.totalorder %s1318_s28, %s1010_s18  ;;  %p1017_p1 = scmp.lt.u32.totalorder %s1015_s14, %s1010_s18 }
  0x40   : > { %p1019_p4 = scmp.lt.u32.totalorder %s1010_s18, %s1318_s28 }
  0x41   : > { %p1013_p5 = pnand %p1012_p3, %p1011_p0  ;;  %p1018_p2 = por %p1017_p1, %p1016_p9 }
  0x43   : > { %p1014_p7 = pneg %p1013_p5  ;;  %p1020_p6 = por %p1019_p4, %p1018_p2 }
  0x45   : > { %p1021_p8 = pnand %p1020_p6, %p1014_p7 }
  0x47   : > { %1024 = shalt.err (!%p1021_p8)
}
  0x48   : > { %s1025_s13 = scalar_lea.vmem %s1320_s12, 64  ;;  %s1165_s16 = smov [#allocation5]  }
  0x49   : > { %p1026_p11 = scmp.ne.s32.totalorder %s1320_s12, %s1025_s13  ;;  %s1030_s20 = sshll.u32 %s1165_s16, 4  ;;  %s1031_s20 = int_to_ptr.vmem [resolvable:$false] %s1030_s20 }
  0x4a   : > { %s1032_s11 = scalar_lea.vmem %s1031_s20, 128  ;;  %p1033_p5 = scmp.lt.s32.totalorder %s1320_s12, %s1031_s20 }
  0x4b   : > { %p1028_p12 = pnand %p1026_p11, %p1012_p3  ;;  %p1034_p9 = scmp.lt.s32.totalorder %s1032_s11, %s1025_s13 }
  0x4d   : > { %p1029_p0 = pneg %p1028_p12  ;;  %p1035_p1 = por %p1034_p9, %p1033_p5 }
  0x4f   : > { %p1036_p2 = pnand %p1035_p1, %p1029_p0 }
  0x51   : > { %1039 = shalt.err (!%p1036_p2)
}
  0x52   : > { %904 = dma.hbm_to_vmem [thread:$0]  (!%p1324_p13), %s1318_s28, 64, %s1320_s12, %s262_s19  }
  0x53   : > { %s836_s18 = sshll.u32 %s1156_s25, 7  ;;  %s284_s13 = scalar_lea.vmem [#allocation8], %s835_s4 }
  0x54   : > { %s1360_s16 = scalar_lea.hbm %s1517_s3, %s836_s18  ;;  %s292_s20 = sshll.u32 %s284_s13, 4  ;;  %s293_s20 = int_to_ptr.vmem [resolvable:$true] %s292_s20 }
  0x55   : > { %s1540_s11 = sand.u32 1, %s1160_s26   ;;  %s1040_s17 = scalar_lea.hbm %s1360_s16, 128 }
  0x56   : > { %s281_s2 = scalar_lea.sflag [#allocation9], %s1540_s11  ;;  %p1041_p7 = scmp.ne.s32.totalorder %s1360_s16, %s1040_s17 }
  0x57   : > { %s1045_s19 = scalar_lea.hbm %s1517_s3, 256  ;;  %p1046_p8 = scmp.lt.u32.totalorder %s1360_s16, %s1517_s3 }
  0x58   : > { %p1043_p4 = pnand %p1041_p7, %p1012_p3  ;;  %p1047_p11 = scmp.lt.u32.totalorder %s1045_s19, %s1040_s17 }
  0x59   : > { %p1049_p0 = scmp.lt.u32.totalorder %s1040_s17, %s1360_s16 }
  0x5a   : > { %p1044_p6 = pneg %p1043_p4  ;;  %p1048_p12 = por %p1047_p11, %p1046_p8 }
  0x5c   : > { %p1050_p5 = por %p1049_p0, %p1048_p12 }
  0x5e   : > { %p1051_p9 = pnand %p1050_p5, %p1044_p6 }
  0x60   : > { %1054 = shalt.err (!%p1051_p9)
}
  0x61   : > { %s1055_s4 = scalar_lea.vmem %s293_s20, 128  ;;  %s1166_s14 = smov [#allocation8]  }
  0x62   : > { %p1056_p1 = scmp.ne.s32.totalorder %s293_s20, %s1055_s4  ;;  %s1060_s8 = sshll.u32 %s1166_s14, 4  ;;  %s1061_s8 = int_to_ptr.vmem [resolvable:$false] %s1060_s8 }
  0x63   : > { %s1062_s13 = scalar_lea.vmem %s1061_s8, 256  ;;  %p1063_p4 = scmp.lt.s32.totalorder %s293_s20, %s1061_s8 }
  0x64   : > { %p1058_p2 = pnand %p1056_p1, %p1012_p3  ;;  %p1064_p10 = scmp.lt.s32.totalorder %s1062_s13, %s1055_s4 }
  0x66   : > { %p1059_p7 = pneg %p1058_p2  ;;  %p1065_p8 = por %p1064_p10, %p1063_p4 }
  0x68   : > { %p1066_p11 = pnand %p1065_p8, %p1059_p7 }
  0x6a   : > { %1069 = shalt.err (!%p1066_p11)
}
  0x6b   : > { %907 = dma.hbm_to_vmem [thread:$0]  (!%p1324_p13), %s1360_s16, 128, %s293_s20, %s281_s2  }
  0x6c   : > { %p1541_p6 = scmp.ne.s32.totalorder %s1530_s7, 0 }
  0x6d   : > { %s1388_s17 = sand.u32 (!%p1541_p6), 1, %s1144_s22   ;;  %p1542_p10 = scmp.ne.s32.totalorder (!%p1541_p6), %s1528_s29, 0 }
  0x6e   : > { %301 = sbr.rel (%p1541_p6) target bundleno = 1502 (0x5de), region = 44  ;;  %s838_s11 = sshll.u32 (!%p1541_p6), %s1388_s17, 2 }
  0x6f   : > { %s304_s28 = scalar_lea.sflag (!%p1541_p6), [#allocation6], %s1388_s17  ;;  %s1392_s12 = scalar_lea.vmem (!%p1541_p6), [#allocation5], %s838_s11 }
  0x75   : > { %1123 = dma.done.wait (%p1542_p10), %s304_s28, 64  }
  0x76   : > { %1125 = vsyncadd (%p1542_p10), %s304_s28, 4294967232  ;;  %s312_s2 = sand.u32 1, %s1239_s27   ;;  %s839_s7 = sshll.u32 %s1388_s17, 3 }
  0x77   : > { %s313_s15 = scalar_lea.sflag [#allocation9], %s312_s2  ;;  %s316_s16 = scalar_lea.vmem [#allocation8], %s839_s7 }
  0x78   : > { %1127 = dma.done.wait (%p1542_p10), %s313_s15, 128  }
  0x79   : > { %1129 = vsyncadd (%p1542_p10), %s313_s15, 4294967168  ;;  %p1543_p13 = scmp.eq.s32.totalorder %s1239_s27, 0 }
  0x7b   : > { %1131 = dma.done.wait (%p1543_p13), [#allocation9], 512   ;;  %p1544_p3 = pmov %p1543_p13 }
  0x7c   : > { %p362_p12 = scmp.lt.s32.totalorder %s1152_s24, 1  ;;  %v1167_v0 = vmov 0.0   ;;  %vm1168_vm0 = vmmov 0   ;;  %v377_v1 = vld [vmem:[#allocation10] sm:$0xff]  ;;  %v378_v2 = vld [vmem:[#allocation10 + $0x8] sm:$0xff]  ;;  %v379_v3 = vld [vmem:[#allocation10 + $0x10] sm:$0xff] }
  0x7d   : > { %1133 = vsyncadd (%p1544_p3), [#allocation9], 4294966784  ;;  %862 = vmatprep.subr.bf16.mxu0 %v1167_v0  ;;  %866 = vmatprep.mubr.msk.bf16.mxu0 %vm1168_vm0, %v1167_v0  ;;  %v381_v4 = vpack.c.bf16 %v378_v2, %v377_v1  ;;  %v380_v5 = vld [vmem:[#allocation10 + $0x18] sm:$0xff]  ;;  %vm390_vm1 = vcmask 261120   ;;  %v844_v12 = vld [vmem:[%s1519_s5] ss:$0 sm:$0xff] }
  0x7e   : > { %s1415_s20 = scalar_select %p362_p12, %s1152_s24, 1  ;;  %870 = vmatprep.subr.bf16.mxu1 %v1167_v0  ;;  %872 = vmatprep.mubr.msk.bf16.mxu1 %vm1168_vm0, %v1167_v0  ;;  %v382_v6 = vpack.c.bf16 %v380_v5, %v379_v3  ;;  %v441_v9 = vld [vmem:[%s316_s16] sm:$0xff]  ;;  %vm435_vm2 = vcmask 257024   ;;  %vm437_vm3 = vcmask 7168   ;;  %v1169_v20 = vmov -inf  }
  0x7f   : > { %863 = vmatpush3.bf16.msra.mxu0 %v381_v4  ;;  %v442_v10 = vpack.c.bf16 %v441_v9, %v441_v9  ;;  %438 = vst.msk [vmem:[#allocation3] sm:$0xff] %vm437_vm3, %v1169_v20  ;;  %vm492_vm4 = vcmask 64512   ;;  %v1170_v26 = vmov 0   ;;  %v509_v32 = vld [vmem:[%s1392_s12] sm:$0xf]  ;;  %vm439_vm5 = vcmask 31744  }
  0x80   : > { %s843_s27 = sshll.u32 %s1415_s20, 3  ;;  %864 = vmatprep.subr.bf16.mxu0 %v1167_v0  ;;  %972 = vset.pattern.permute.xlu0 %v1170_v26  ;;  %v510_v33 = vpack.c.bf16 %v509_v32, %v509_v32  ;;  %440 = vst.msk [vmem:[#allocation4] sm:$0xff] %vm439_vm5, %v1167_v0  ;;  %v1171_v41 = vmov 3   ;;  %s1448_s14 = scalar_lea.vmem [#allocation11], %s839_s7  ;;  %vm581_vm6 = vcmask 59392   ;;  %vm587_vm7 = vcmask 23552  }
  0x81   : > { %s369_s9 = scalar_lea.vmem %s1515_s1, %s843_s27  ;;  %v449_v11 = vsel %vm390_vm1, %v442_v10, 0  ;;  %973 = vset.pattern.permute.xlu1 %v1170_v26  ;;  %671 = vst [vmem:[%s1448_s14] sm:$0xff] %v1167_v0  ;;  %s842_s8 = sshll.u32 %s1415_s20, 2  ;;  %vm676_vm8 = vcmask 16384   ;;  %vm672_vm9 = vcmask 18432   ;;  %vm674_vm10 = vcmask 26648  }
  0x82   : > { %v375_v7 = vld [vmem:[%s369_s9] sm:$0xff]  ;;  %871 = vmatpush3.bf16.xpose.msra.mxu1 %v449_v11  ;;  %v515_v34 = vsel %vm492_vm4, %v510_v33, 0  ;;  %s365_s28 = scalar_lea.vmem %s1514_s0, %s842_s8  ;;  %s850_s12 = sshll.u32 %s1152_s24, 7 }
  0x83   : > { %v376_v8 = vpack.c.bf16 %v375_v7, %v375_v7  ;;  %865 = vmatpush3.bf16.msra.mxu0 %v382_v6  ;;  %882 = vmatprep.subr.mxu1 %v1167_v0  ;;  %v580_v52 = vld [vmem:[%s365_s28] sm:$0x7]  ;;  %s692_s2 = sshll.u32 %s1448_s14, 4  ;;  %s1463_s16 = scalar_lea.hbm %s1520_s6, %s850_s12  ;;  %s1465_s2 = int_to_ptr.vmem [resolvable:$true] %s692_s2 }
  0x84   : > { %876 = vmatprep.subr.bf16.mxu0 %v1167_v0  ;;  %v582_v53 = vsel %vm581_vm6, %v580_v52, 0.0  ;;  %s679_s20 = scalar_lea.sflag [#allocation7], %s1388_s17  ;;  %s1070_s27 = scalar_lea.vmem %s1465_s2, 128 }
  0x85   : > { %p1071_p0 = scmp.ne.s32.totalorder %s1465_s2, %s1070_s27  ;;  %p1545_p5 = scmp.ne.s32.totalorder %s1536_s10, 0 }
  0x86   : > { %867 = vmatmul.mubr.msk.bf16.vlgmr.msra.gmra.mrb[0].mxu0 %vm390_vm1, %v376_v8  ;;  %v491_v27 = vld [vmem:[#allocation3] sm:$0xff]  ;;  %s1172_s24 = smov [#allocation11]  }
  0x87   : > { %878 = vmatprep.mubr.msk.bf16.mxu0 %vm1168_vm0, %v1167_v0  ;;  %v557_v42 = vld [vmem:[#allocation4] sm:$0xff]  ;;  %p1072_p9 = pnand %p1071_p0, %p1545_p5  ;;  %s1074_s29 = sshll.u32 %s1172_s24, 4  ;;  %s1075_s29 = int_to_ptr.vmem [resolvable:$false] %s1074_s29 }
  0x88   : > { %s1076_s19 = scalar_lea.vmem %s1075_s29, 256  ;;  %p1077_p2 = scmp.lt.s32.totalorder %s1465_s2, %s1075_s29 }
  0x89   : > { %p1073_p1 = pneg %p1072_p9  ;;  %p1078_p7 = scmp.lt.s32.totalorder %s1076_s19, %s1070_s27 }
  0x8b   : > { %p1079_p4 = por %p1078_p7, %p1077_p2 }
  0x8c   : > { %877 = vmatpush3.bf16.xpose.msra.mxu0 %v515_v34 }
  0x8d   : > { %p1080_p8 = pnand %p1079_p4, %p1073_p1 }
 0x159   : > { %v428_v13 = vpop.f32.mrb[0].mxu0 }
 0x15a   : > { %v429_v14 = vadd.f32 %v844_v12, %v428_v13  ;;  %v868_v15 = vpop.f32.mrb[1].mxu0 }
 0x15b   : > { %v431_v16 = vpop.f32.mrb[2].mxu0 }
 0x15c   : > { %v434_v17 = vpack.c.bf16 %v429_v14, %v429_v14  ;;  %v869_v18 = vpop.f32.mrb[3].mxu0 }
 0x15e   : > { %436 = vst.msk [vmem:[#allocation2] sm:$0xf] %vm435_vm2, %v434_v17 }
 0x165   : > { %v443_v19 = vld [vmem:[#allocation2] sm:$0xf] }
 0x166   : > { %873 = vmatmul.mubr.msk.bf16.vlgmr.msra.gmra.mrb[0].mxu1 %vm390_vm1, %v443_v19 }
 0x167   : > { %884 = vmatprep.mubr.msk.f32.mxu1 %vm1168_vm0, %v1167_v0 }
 0x239   : > { %v485_v21 = vpop.f32.mrb[0].mxu1 }
 0x23a   : > { %v874_v22 = vpop.f32.mrb[1].mxu1  ;;  %v493_v23 = vsel %vm492_vm4, %v485_v21, -inf }
 0x23b   : > { %494 = vmax.xlane.f32.xlu0 %v493_v23  ;;  %v488_v24 = vpop.f32.mrb[2].mxu1 }
 0x23c   : > { %v875_v25 = vpop.f32.mrb[3].mxu1 }
 0x2c8   : > { %v495_v28 = vpop.xlane.xlu0 %494 }
 0x2c9   : > { %v496_v29 = vmax.f32 %v491_v27, %v495_v28 }
 0x2cb   : > { %v497_v30 = vsub.f32 %v491_v27, %v496_v29  ;;  %568 = vst.msk [vmem:[#allocation3] sm:$0xff] %vm437_vm3, %v496_v29  ;;  %502 = vperm.xlu0 %972, %v496_v29  }
 0x2cd   : > { %v498_v31 = vmul.f32 1.442695, %v497_v30 }
 0x2cf   : > { %976 = vpow2.f32 %v498_v31  ;;  %975 = vset.pattern.permute.xlu0 %v1171_v41 }
 0x2d9   : > { %v977_v35 = vpop.eup %976 }
 0x2da   : > { %560 = vperm.xlu1 %973, %v977_v35  }
 0x2de   : > { %974 = vset.pattern.permute.xlu1 %v1171_v41 }
 0x34a   : > { %v503_v36 = vpop.permute.xlu0 %502 }
 0x34b   : > { %v505_v37 = vsub.f32 %v485_v21, %v503_v36 }
 0x34d   : > { %v506_v38 = vmul.f32 1.442695, %v505_v37 }
 0x34f   : > { %978 = vpow2.f32 %v506_v38 }
 0x359   : > { %v979_v39 = vpop.eup %978  ;;  %v561_v43 = vpop.permute.xlu1 %560 }
 0x35a   : > { %v508_v40 = vpack.c.bf16 %v979_v39, %v979_v39  ;;  %v563_v44 = vmul.f32 %v561_v43, %v557_v42 }
 0x35c   : > { %879 = vmatmul.mubr.msk.bf16.vlgmr.msra.gmra.mrb[4].mxu0 %vm492_vm4, %v508_v40 }
 0x42f   : > { %v551_v45 = vpop.f32.mrb[4].mxu0 }
 0x430   : > { %v564_v46 = vadd.f32 %v563_v44, %v551_v45  ;;  %v880_v47 = vpop.f32.mrb[5].mxu0 }
 0x431   : > { %v554_v48 = vpop.f32.mrb[6].mxu0 }
 0x432   : > { %566 = vst.msk [vmem:[#allocation4] sm:$0xff] %vm439_vm5, %v564_v46  ;;  %v881_v49 = vpop.f32.mrb[7].mxu0 }
 0x439   : > { %v572_v50 = vld [vmem:[#allocation4] sm:$0xff] }
 0x43a   : > { %980 = vrcp.f32 %v572_v50 }
 0x444   : > { %v981_v51 = vpop.eup %980 }
 0x445   : > { %576 = vperm.xlu1 %974, %v981_v51  }
 0x469   : > { %583 = vadd.xlane.f32.xlu1 %v582_v53 }
 0x4c4   : > { %v577_v54 = vpop.permute.xlu1 %576 }
 0x4c5   : > { %v579_v55 = vmul.f32 %v577_v54, %v572_v50 }
 0x4c7   : > { %v588_v56 = vsel %vm587_vm7, %v579_v55, 0.0 }
 0x4c8   : > { %v589_v57 = vrot.slane %v588_v56, 4 }
 0x4ca   : > { %v590_v58 = vadd.f32 %v589_v57, %v588_v56 }
 0x4cc   : > { %v591_v59 = vrot.slane %v590_v58, 2 }
 0x4ce   : > { %v592_v60 = vadd.f32 %v591_v59, %v590_v58 }
 0x4d0   : > { %v593_v61 = vrot.slane %v592_v60, 1 }
 0x4d2   : > { %v594_v62 = vadd.f32 %v593_v61, %v592_v60 }
 0x4d4   : > { %v595_v63 = vmul.f32 0.125, %v594_v62 }
 0x4d6   : > { %v597_v0 = vsub.f32 %v579_v55, %v595_v63  ;;  %677 = vst.msk [vmem:[%s1448_s14 + $0x3] sm:$0x1] %vm676_vm8, %v595_v63 }
 0x4d8   : > { %883 = vmatpush3.msra.mxu1 %v597_v0 }
 0x4f6   : > { %v584_v1 = vpop.xlane.xlu1 %583 }
 0x4f7   : > { %v586_v2 = vmul.f32 0.125, %v584_v1 }
 0x4f9   : > { %v596_v3 = vsub.f32 %v580_v52, %v586_v2 }
 0x4fb   : > { %885 = vmatmul.mubr.msk.f32.vlgmr.msra.gmra.mrb[4].mxu1 %vm492_vm4, %v596_v3 }
 0x5ce   : > { %v667_v4 = vpop.f32.mrb[4].mxu1 }
 0x5cf   : > { %673 = vst.msk [vmem:[%s1448_s14] sm:$0x7] %vm672_vm9, %v667_v4  ;;  %v886_v5 = vpop.f32.mrb[5].mxu1 }
 0x5d0   : > { %675 = vst.msk [vmem:[%s1448_s14] sm:$0x7] %vm674_vm10, %v586_v2 }
 0x5d1   : > { %1083 = shalt.err (!%p1080_p8)
}
 0x5d2   : > { %s1084_s17 = scalar_lea.hbm %s1463_s16, 128  ;;  %s1088_s4 = scalar_lea.hbm %s1520_s6, 256 }
 0x5d3   : > { %p1085_p11 = scmp.ne.s32.totalorder %s1463_s16, %s1084_s17  ;;  %p1089_p13 = scmp.lt.u32.totalorder %s1463_s16, %s1520_s6 }
 0x5d4   : > { %p1090_p3 = scmp.lt.u32.totalorder %s1088_s4, %s1084_s17  ;;  %p1092_p0 = scmp.lt.u32.totalorder %s1084_s17, %s1463_s16 }
 0x5d5   : > { %p1086_p6 = pnand %p1085_p11, %p1545_p5 }
 0x5d6   : > { %p1091_p12 = por %p1090_p3, %p1089_p13 }
 0x5d7   : > { %p1087_p10 = pneg %p1086_p6 }
 0x5d8   : > { %p1093_p9 = por %p1092_p0, %p1091_p12 }
 0x5da   : > { %p1094_p1 = pnand %p1093_p9, %p1087_p10 }
 0x5dc   : > { %1097 = shalt.err (!%p1094_p1)
}
 0x5dd   : > { %895 = dma.vmem_to_hbm [thread:$0]  (%p1545_p5), %s1465_s2, 128, %s1463_s16, %s679_s20  }
 0x5de PF: > { %s704_s13 = sand.u32 1, %s1140_s21   ;;  %p1546_p2 = scmp.ne.s32.totalorder %s1529_s30, 0 }
 0x5df   : > { %p1547_p7 = scmp.ge.s32.totalorder %s1160_s26, 2  ;;  %s705_s11 = scalar_lea.sflag [#allocation7], %s704_s13 }
 0x5e1   : > { %p909_p4 = pnand %p1547_p7, %p1546_p2 }
 0x5e3   : > { %1135 = dma.done.wait (!%p909_p4), %s705_s11, 128  }
 0x5e4   : > { %1137 = vsyncadd (!%p909_p4), %s705_s11, 4294967168  ;;  %s25_s26 = sadd.s32 1, %s1160_s26   ;;  %s1548_s10 = sld [smem:[#allocation17_spill]] }
 0x5e5   : > { %p22_p8 = scmp.ge.s32.totalorder %s25_s26, 4   ;;  %s1549_s28 = sld [smem:[#allocation16_spill]] }
 0x5e6   : > { %s1550_s21 = smov %s1144_s22  ;;  %s1551_s22 = smov %s1148_s23 }
 0x5e7   : > { %s1553_s24 = smov %s1156_s25  ;;  %24 = sbr.rel (!%p22_p8) target bundleno = 11 (0xb), region = 120 }
 0x5ea   : > { %s1552_s23 = smov %s1548_s10 }
 0x5eb   : > { %s1554_s25 = smov %s1549_s28 }
 0x5ee   :  { %710 = vsyncpa [#allocation6], 1 }
 0x5ef   :  { %712 = vsyncpa [#allocation6 + $0x1], 1 }
 0x5f0   :  { %713 = vsyncpa [#allocation9], 1 }
 0x5f1   :  { %715 = vsyncpa [#allocation9 + $0x1], 1 }
 0x5f2   :  { %716 = vsyncpa [#allocation7], 1 }
 0x5f3   :  { %718 = vsyncpa [#allocation7 + $0x1], 1 }

</bundles_post_ra>
